<compile_context>
chip_gen: v7x
topology: tpu7x:2x2x1
jax: 0.10.0
libtpu: 0.0.40
codegen_flags: <defaults>
</compile_context>

<pallas_src>
import functools

import jax
import jax.numpy as jnp
from jax.experimental import pallas as pl
from jax.experimental.pallas import tpu as pltpu

FPN_CH = 16          # backbone / FPN out channels
NUM_ANCHORS = 3      # anchors per location


# ----------------------------------------------------------------------------- helpers
def _round_up(x, m):
    return (x + m - 1) // m * m


def _pick_tm(m):
    """Lane-axis (M) tile size.

    Must be a multiple of 128 (or the full dim).  Small maps (p3/p4 here) take a
    single full-dim block; larger maps are split into >=2 blocks so v7x's dual
    TensorCores both get work, capped at 1024 (still tiny next to VMEM)."""
    if m <= 256:
        return m
    return int(min(1024, _round_up(pl.cdiv(m, 2), 128)))


# ----------------------------------------------------------------------------- kernels
def _convT_kernel(a_ref, w_ref, b_ref, o_ref, *, relu):
    """o^T = [relu](W^T @ A^T + bias).  A block: (K, tm) bf16, W: (Cout, K) bf16,
    bias: (Cout, 1) f32, out block: (Cout, tm) f32 -> lane-dense stores."""
    acc = jnp.dot(w_ref[...], a_ref[...], preferred_element_type=jnp.float32)
    out = acc + b_ref[...]                       # (Cout, tm) + (Cout, 1)
    if relu:
        out = jnp.maximum(out, 0.0)
    o_ref[...] = out.astype(o_ref.dtype)


def _rpn_headT_kernel(a_ref, w1_ref, b1_ref, w2_ref, b2_ref, o_ref):
    """Fused RPN head (transposed): hidden = relu(W1 @ A^T + b1);
    o^T = W2 @ hidden + b2.  The hidden map never leaves VMEM."""
    hidden = jnp.dot(w1_ref[...], a_ref[...], preferred_element_type=jnp.float32)
    hidden = jnp.maximum(hidden + b1_ref[...], 0.0)                   # f32 (16, tm)
    out = jnp.dot(w2_ref[...], hidden.astype(w2_ref.dtype),
                  preferred_element_type=jnp.float32) + b2_ref[...]   # f32 (15, tm)
    o_ref[...] = out.astype(o_ref.dtype)


# ----------------------------------------------------------------------------- pallas wrappers
_COMPILER_PARAMS = pltpu.CompilerParams(
    dimension_semantics=("parallel",),
    vmem_limit_bytes=32 * 1024 * 1024,   # explicit headroom; v7x has only 64 MiB physical
)


def _matmul_t(a_km, w_t, b_col, relu):
    """(K, M)bf16 taps x (Cout, K)bf16 weights -> (Cout, M)f32, bias + optional ReLU."""
    K, M = a_km.shape
    Cout = w_t.shape[0]
    tm = _pick_tm(M)
    return pl.pallas_call(
        functools.partial(_convT_kernel, relu=relu),
        out_shape=jax.ShapeDtypeStruct((Cout, M), jnp.float32),
        grid=(pl.cdiv(M, tm),),
        in_specs=[
            pl.BlockSpec((K, tm), lambda i: (0, i)),
            pl.BlockSpec((Cout, K), lambda i: (0, 0)),
            pl.BlockSpec((Cout, 1), lambda i: (0, 0)),
        ],
        out_specs=pl.BlockSpec((Cout, tm), lambda i: (0, i)),
        compiler_params=_COMPILER_PARAMS,
    )(a_km, w_t, b_col)


def _rpn_matmul_t(a_km, w1_t, b1_col, w2_t, b2_col):
    """Fused (3x3 conv + ReLU + fused 1x1 cls/bbox) over all levels in one call."""
    K, M = a_km.shape
    Chid = w1_t.shape[0]
    Nh = w2_t.shape[0]
    tm = _pick_tm(M)
    return pl.pallas_call(
        _rpn_headT_kernel,
        out_shape=jax.ShapeDtypeStruct((Nh, M), jnp.float32),
        grid=(pl.cdiv(M, tm),),
        in_specs=[
            pl.BlockSpec((K, tm), lambda i: (0, i)),
            pl.BlockSpec((Chid, K), lambda i: (0, 0)),
            pl.BlockSpec((Chid, 1), lambda i: (0, 0)),
            pl.BlockSpec((Nh, Chid), lambda i: (0, 0)),
            pl.BlockSpec((Nh, 1), lambda i: (0, 0)),
        ],
        out_specs=pl.BlockSpec((Nh, tm), lambda i: (0, i)),
        compiler_params=_COMPILER_PARAMS,
    )(a_km, w1_t, b1_col, w2_t, b2_col)


# ----------------------------------------------------------------------------- conv glue (channel-major)
def _im2col_cm(x_cnhw, k, stride, pad):
    """Channel-major im2col: (C, N, H, W) -> (k*k*C, N*Ho*Wo) bf16.

    Every step is a contiguous slice/reshape (no lane shuffles): K-row index is
    tap*C + c with tap = dy*k + dx (tap-major, so K=144 splits cleanly into a
    128-row MXU pass + a 16-row residual on v5e)."""
    x = x_cnhw.astype(jnp.bfloat16)
    C, N, H, W = x.shape
    xp = jnp.pad(x, ((0, 0), (0, 0), (pad, pad), (pad, pad)))
    Ho = (H + 2 * pad - k) // stride + 1
    Wo = (W + 2 * pad - k) // stride + 1
    taps = []
    for dy in range(k):
        for dx in range(k):
            t = xp[:, :, dy:dy + stride * Ho:stride, dx:dx + stride * Wo:stride]
            taps.append(t.reshape(C, N * Ho * Wo))
    return jnp.concatenate(taps, axis=0), (N, Ho, Wo)


def conv3x3_cm(x_cnhw, w_t, b_col, stride, relu=True):
    """PyTorch-semantics 3x3 Conv2d (pad=1), channel-major in / channel-major out."""
    a, (N, Ho, Wo) = _im2col_cm(x_cnhw, 3, stride, 1)
    out = _matmul_t(a, w_t, b_col, relu)                 # (Cout, N*Ho*Wo) f32
    return out.reshape(-1, N, Ho, Wo)                    # (Cout, N, Ho, Wo)


def rpn_head_fused(feats_cm, w1_t, b1_col, w2_t, b2_col):
    """Shared RPN head applied to all levels with ONE pallas_call."""
    # TODO(synk): replace the cross-level concat with scalar-prefetched per-level
    #             row offsets in the index_map to avoid the extra HBM copy.
    a_list, shapes = [], []
    for f in feats_cm:
        a, shp = _im2col_cm(f, 3, 1, 1)
        a_list.append(a)
        shapes.append(shp)
    a = jnp.concatenate(a_list, axis=1)                  # (144, sum_l N*Hl*Wl)
    out = _rpn_matmul_t(a, w1_t, b1_col, w2_t, b2_col)   # (15, M_total)
    level_outs, off = [], 0
    for (N, Ho, Wo) in shapes:
        m = N * Ho * Wo
        level_outs.append(out[:, off:off + m].reshape(-1, N, Ho, Wo))
        off += m
    return level_outs


# ----------------------------------------------------------------------------- anchors (no-grad glue)
def generate_anchors(feat_shapes, strides, anchor_scale=4.0,
                     aspect_ratios=(0.5, 1.0, 2.0)):
    # TODO(synk): reference anchor generators may place centers at i*stride (no 0.5
    #             offset) and use a straddle_thresh for visibility; verify vs PyTorch.
    ratios = jnp.array(aspect_ratios, jnp.float32)
    all_anchors = []
    for (Hl, Wl), s in zip(feat_shapes, strides):
        base_size = anchor_scale * s
        ws = base_size * jnp.sqrt(1.0 / ratios)
        hs = base_size * jnp.sqrt(ratios)
        base = jnp.stack([-ws / 2, -hs / 2, ws / 2, hs / 2], axis=1)   # (A,4)
        sx = (jnp.arange(Wl, dtype=jnp.float32) + 0.5) * s
        sy = (jnp.arange(Hl, dtype=jnp.float32) + 0.5) * s
        gx, gy = jnp.meshgrid(sx, sy)
        shifts = jnp.stack([gx, gy, gx, gy], axis=-1).reshape(-1, 1, 4)
        all_anchors.append((shifts + base[None]).reshape(-1, 4))
    return jnp.concatenate(all_anchors, axis=0)                         # (total,4)


def anchor_visibility(anchors, image_sizes):
    # Tiny VPU-only work on ~1k anchors: plain fused jnp ops beat a kernel launch.
    sizes = image_sizes.astype(jnp.float32)
    h = sizes[:, 0:1]
    w = sizes[:, 1:2]
    x1 = anchors[None, :, 0]
    y1 = anchors[None, :, 1]
    x2 = anchors[None, :, 2]
    y2 = anchors[None, :, 3]
    vis = (x1 >= 0.0) & (y1 >= 0.0) & (x2 < w) & (y2 < h)
    return vis.astype(jnp.int32)


# ----------------------------------------------------------------------------- params
def _conv_init(key, cout, cin, k):
    fan_in = cin * k * k
    w = jax.random.normal(key, (cout, cin, k, k), jnp.float32) * (2.0 / fan_in) ** 0.5
    b = jnp.zeros((cout,), jnp.float32)
    return w, b


def init_params(key):
    keys = jax.random.split(key, 6)
    p = {}
    p["bb1_w"], p["bb1_b"] = _conv_init(keys[0], FPN_CH, 3, 3)
    p["bb2_w"], p["bb2_b"] = _conv_init(keys[1], FPN_CH, FPN_CH, 3)
    p["bb3_w"], p["bb3_b"] = _conv_init(keys[2], FPN_CH, FPN_CH, 3)
    p["rpn_conv_w"], p["rpn_conv_b"] = _conv_init(keys[3], FPN_CH, FPN_CH, 3)
    p["cls_w"], p["cls_b"] = _conv_init(keys[4], NUM_ANCHORS, FPN_CH, 1)
    p["bbox_w"], p["bbox_b"] = _conv_init(keys[5], NUM_ANCHORS * 4, FPN_CH, 1)
    return p


def prepare_params(p):
    """One-time (hoisted) weight re-layout for the transposed formulation:
    OIHW -> (Cout, k*k*Cin) bf16 (column order = tap*Cin + cin, matching im2col),
    biases -> (Cout, 1) f32 columns, cls/bbox 1x1 convs fused into one (15, 16)."""
    def w_t_3x3(w_oihw):
        cout, cin, kh, kw = w_oihw.shape
        return (jnp.transpose(w_oihw, (0, 2, 3, 1))       # (Cout, kh, kw, Cin)
                .reshape(cout, kh * kw * cin).astype(jnp.bfloat16))

    def w_t_1x1(w_oihw):
        return w_oihw[:, :, 0, 0]                         # (Cout, Cin)

    def b_col(b):
        return b[:, None].astype(jnp.float32)             # (Cout, 1)

    return {
        "bb1_w": w_t_3x3(p["bb1_w"]), "bb1_b": b_col(p["bb1_b"]),
        "bb2_w": w_t_3x3(p["bb2_w"]), "bb2_b": b_col(p["bb2_b"]),
        "bb3_w": w_t_3x3(p["bb3_w"]), "bb3_b": b_col(p["bb3_b"]),
        "rpn_conv_w": w_t_3x3(p["rpn_conv_w"]), "rpn_conv_b": b_col(p["rpn_conv_b"]),
        "head_w": jnp.concatenate([w_t_1x1(p["cls_w"]), w_t_1x1(p["bbox_w"])],
                                  axis=0).astype(jnp.bfloat16),          # (15, 16)
        "head_b": jnp.concatenate([p["cls_b"], p["bbox_b"]])[:, None],   # (15, 1)
    }


# ----------------------------------------------------------------------------- Graphable forward
def graphable_forward(prep, images_nchw, image_sizes):
    batch = images_nchw.shape[0]
    x = jnp.transpose(images_nchw, (1, 0, 2, 3))          # NCHW -> CNHW (leading swap only)

    # ---- backbone: 3-level FPN-like feature stack (strides 1, 2, 4), channel-major
    # NOTE: intermediate feature maps stay f32 because they are also user-visible
    #       outputs; the im2col casts to bf16 only for the MXU operands.
    p2 = conv3x3_cm(x, prep["bb1_w"], prep["bb1_b"], stride=1)    # (16, N, 16, 16)
    p3 = conv3x3_cm(p2, prep["bb2_w"], prep["bb2_b"], stride=2)   # (16, N,  8,  8)
    p4 = conv3x3_cm(p3, prep["bb3_w"], prep["bb3_b"], stride=2)   # (16, N,  4,  4)
    feats_cm = (p2, p3, p4)
    features = tuple(jnp.transpose(f, (1, 0, 2, 3)) for f in feats_cm)   # NCHW out

    # ---- RPN head: one fused pallas_call for all levels (cls + bbox fused to 15 rows)
    head_outs = rpn_head_fused(feats_cm, prep["rpn_conv_w"], prep["rpn_conv_b"],
                               prep["head_w"], prep["head_b"])
    objectness = tuple(jnp.transpose(h[:NUM_ANCHORS], (1, 0, 2, 3))
                       for h in head_outs)                                # (N, A, H, W)
    rpn_box_regression = tuple(jnp.transpose(h[NUM_ANCHORS:], (1, 0, 2, 3))
                               for h in head_outs)                        # (N, 4A, H, W)

    # ---- anchor generator (torch.no_grad block: pure arithmetic, no params)
    feat_shapes = [(f.shape[2], f.shape[3]) for f in feats_cm]
    anchors = generate_anchors(feat_shapes, strides=(1, 2, 4))            # (total, 4)
    anchor_boxes = jnp.broadcast_to(anchors[None], (batch, anchors.shape[0], 4))
    anchor_visibility_out = anchor_visibility(anchors, image_sizes)       # (batch, total)

    return features + objectness + rpn_box_regression \
        + (anchor_boxes, anchor_visibility_out)


# ----------------------------------------------------------------------------- main
if __name__ == "__main__":
    key = jax.random.PRNGKey(0)
    k_img, k_par = jax.random.split(key)

    batch, cin, H, W = 2, 3, 16, 16
    images_tensor = jax.random.normal(k_img, (batch, cin, H, W), jnp.float32)   # NCHW
    image_sizes_tensor = jnp.array([[16, 16], [14, 15]], jnp.int32)             # (h, w)

    params = init_params(k_par)
    prep = prepare_params(params)          # hoisted one-time weight re-layout

    fwd = jax.jit(graphable_forward)
    outs = fwd(prep, images_tensor, image_sizes_tensor)
    outs = jax.block_until_ready(outs)

    # sanity checks on the 11-tuple (3 features + 3 objectness + 3 box_reg + anchors + vis)
    assert len(outs) == 11
    assert outs[0].shape == (batch, FPN_CH, 16, 16)
    assert outs[1].shape == (batch, FPN_CH, 8, 8)
    assert outs[2].shape == (batch, FPN_CH, 4, 4)
    assert outs[3].shape == (batch, NUM_ANCHORS, 16, 16)
    assert outs[6].shape == (batch, NUM_ANCHORS * 4, 16, 16)
    assert outs[9].shape[0] == batch and outs[9].shape[2] == 4
    assert outs[10].shape == outs[9].shape[:2]
    assert all(bool(jnp.all(jnp.isfinite(o))) for o in outs[:9])

    print("KERNEL_OK")
</pallas_src>

<mosaic_0001>
module attributes {stable_mosaic.version = 11 : i64} {
  func.func @_convT_kernel(%arg0: i32, %arg1: memref<27x256xbf16, #tpu.memory_space<vmem>>, %arg2: memref<16x27xbf16, #tpu.memory_space<vmem>>, %arg3: memref<16x1xf32, #tpu.memory_space<vmem>>, %arg4: memref<16x256xf32, #tpu.memory_space<vmem>>) attributes {dimension_semantics = [#tpu.dimension_semantics<parallel>], iteration_bounds = array<i64: 2>, scalar_prefetch = 0 : i64, scratch_operands = 0 : i64, tpu.core_type = #tpu.core_type<tc>, window_params = [{transform_indices = @transform_0, window_bounds = array<i64: 27, 256>}, {pipeline_mode = #tpu.pipeline_mode<synchronous>, transform_indices = @transform_1, window_bounds = array<i64: 16, 27>}, {pipeline_mode = #tpu.pipeline_mode<synchronous>, transform_indices = @transform_2, window_bounds = array<i64: 16, 1>}, {transform_indices = @transform_3, window_bounds = array<i64: 16, 256>}]} {
    %c0 = arith.constant 0 : index
    %c0_0 = arith.constant 0 : index
    %0 = vector.load %arg2[%c0, %c0_0] : memref<16x27xbf16, #tpu.memory_space<vmem>>, vector<16x27xbf16>
    %c0_1 = arith.constant 0 : index
    %c0_2 = arith.constant 0 : index
    %1 = vector.load %arg1[%c0_1, %c0_2] : memref<27x256xbf16, #tpu.memory_space<vmem>>, vector<27x256xbf16>
    %cst = arith.constant dense<0.000000e+00> : vector<16x256xf32>
    %2 = tpu.matmul %0, %1, %cst {dimension_numbers = #tpu.dot_dimension_numbers<[1], [0], [0], [1], [0, 0, 1, 1], [], []>} : vector<16x27xbf16>, vector<27x256xbf16>, vector<16x256xf32> -> vector<16x256xf32>
    %c0_3 = arith.constant 0 : index
    %c0_4 = arith.constant 0 : index
    %3 = vector.load %arg3[%c0_3, %c0_4] : memref<16x1xf32, #tpu.memory_space<vmem>>, vector<16x1xf32>
    %4 = vector.broadcast %3 : vector<16x1xf32> to vector<16x256xf32>
    %5 = arith.addf %2, %4 : vector<16x256xf32>
    %cst_5 = arith.constant 0.000000e+00 : f32
    %6 = vector.broadcast %cst_5 : f32 to vector<16x256xf32>
    %7 = arith.maximumf %5, %6 : vector<16x256xf32>
    %c0_6 = arith.constant 0 : index
    %c0_7 = arith.constant 0 : index
    %8 = vector.load %arg4[%c0_6, %c0_7] : memref<16x256xf32, #tpu.memory_space<vmem>>, vector<16x256xf32>
    tpu.vector_store %arg4[%c0_6, %c0_7], %7 {strides = array<i32>} : memref<16x256xf32, #tpu.memory_space<vmem>>, vector<16x256xf32>,
    return
  }
  func.func @transform_0(%arg0: i32) -> (i32, i32) {
    %c0_i32 = arith.constant 0 : i32
    %c0_i32_0 = arith.constant 0 : i32
    return %c0_i32, %arg0 : i32, i32
  }
  func.func @transform_1(%arg0: i32) -> (i32, i32) {
    %c0_i32 = arith.constant 0 : i32
    %c0_i32_0 = arith.constant 0 : i32
    %c0_i32_1 = arith.constant 0 : i32
    return %c0_i32, %c0_i32_0 : i32, i32
  }
  func.func @transform_2(%arg0: i32) -> (i32, i32) {
    %c0_i32 = arith.constant 0 : i32
    %c0_i32_0 = arith.constant 0 : i32
    %c0_i32_1 = arith.constant 0 : i32
    return %c0_i32, %c0_i32_0 : i32, i32
  }
  func.func @transform_3(%arg0: i32) -> (i32, i32) {
    %c0_i32 = arith.constant 0 : i32
    %c0_i32_0 = arith.constant 0 : i32
    return %c0_i32, %arg0 : i32, i32
  }
}

module attributes {stable_mosaic.version = 11 : i64} {
  func.func @_convT_kernel(%arg0: i32, %arg1: memref<144x128xbf16, #tpu.memory_space<vmem>>, %arg2: memref<16x144xbf16, #tpu.memory_space<vmem>>, %arg3: memref<16x1xf32, #tpu.memory_space<vmem>>, %arg4: memref<16x128xf32, #tpu.memory_space<vmem>>) attributes {dimension_semantics = [#tpu.dimension_semantics<parallel>], iteration_bounds = array<i64: 1>, scalar_prefetch = 0 : i64, scratch_operands = 0 : i64, tpu.core_type = #tpu.core_type<tc>, window_params = [{transform_indices = @transform_0, window_bounds = array<i64: 144, 128>}, {pipeline_mode = #tpu.pipeline_mode<synchronous>, transform_indices = @transform_1, window_bounds = array<i64: 16, 144>}, {pipeline_mode = #tpu.pipeline_mode<synchronous>, transform_indices = @transform_2, window_bounds = array<i64: 16, 1>}, {transform_indices = @transform_3, window_bounds = array<i64: 16, 128>}]} {
    %c0 = arith.constant 0 : index
    %c0_0 = arith.constant 0 : index
    %0 = vector.load %arg2[%c0, %c0_0] : memref<16x144xbf16, #tpu.memory_space<vmem>>, vector<16x144xbf16>
    %c0_1 = arith.constant 0 : index
    %c0_2 = arith.constant 0 : index
    %1 = vector.load %arg1[%c0_1, %c0_2] : memref<144x128xbf16, #tpu.memory_space<vmem>>, vector<144x128xbf16>
    %cst = arith.constant dense<0.000000e+00> : vector<16x128xf32>
    %2 = tpu.matmul %0, %1, %cst {dimension_numbers = #tpu.dot_dimension_numbers<[1], [0], [0], [1], [0, 0, 1, 1], [], []>} : vector<16x144xbf16>, vector<144x128xbf16>, vector<16x128xf32> -> vector<16x128xf32>
    %c0_3 = arith.constant 0 : index
    %c0_4 = arith.constant 0 : index
    %3 = vector.load %arg3[%c0_3, %c0_4] : memref<16x1xf32, #tpu.memory_space<vmem>>, vector<16x1xf32>
    %4 = vector.broadcast %3 : vector<16x1xf32> to vector<16x128xf32>
    %5 = arith.addf %2, %4 : vector<16x128xf32>
    %cst_5 = arith.constant 0.000000e+00 : f32
    %6 = vector.broadcast %cst_5 : f32 to vector<16x128xf32>
    %7 = arith.maximumf %5, %6 : vector<16x128xf32>
    %c0_6 = arith.constant 0 : index
    %c0_7 = arith.constant 0 : index
    %8 = vector.load %arg4[%c0_6, %c0_7] : memref<16x128xf32, #tpu.memory_space<vmem>>, vector<16x128xf32>
    tpu.vector_store %arg4[%c0_6, %c0_7], %7 {strides = array<i32>} : memref<16x128xf32, #tpu.memory_space<vmem>>, vector<16x128xf32>,
    return
  }
  func.func @transform_0(%arg0: i32) -> (i32, i32) {
    %c0_i32 = arith.constant 0 : i32
    %c0_i32_0 = arith.constant 0 : i32
    return %c0_i32, %arg0 : i32, i32
  }
  func.func @transform_1(%arg0: i32) -> (i32, i32) {
    %c0_i32 = arith.constant 0 : i32
    %c0_i32_0 = arith.constant 0 : i32
    %c0_i32_1 = arith.constant 0 : i32
    return %c0_i32, %c0_i32_0 : i32, i32
  }
  func.func @transform_2(%arg0: i32) -> (i32, i32) {
    %c0_i32 = arith.constant 0 : i32
    %c0_i32_0 = arith.constant 0 : i32
    %c0_i32_1 = arith.constant 0 : i32
    return %c0_i32, %c0_i32_0 : i32, i32
  }
  func.func @transform_3(%arg0: i32) -> (i32, i32) {
    %c0_i32 = arith.constant 0 : i32
    %c0_i32_0 = arith.constant 0 : i32
    return %c0_i32, %arg0 : i32, i32
  }
}

module attributes {stable_mosaic.version = 11 : i64} {
  func.func @_convT_kernel(%arg0: i32, %arg1: memref<144x32xbf16, #tpu.memory_space<vmem>>, %arg2: memref<16x144xbf16, #tpu.memory_space<vmem>>, %arg3: memref<16x1xf32, #tpu.memory_space<vmem>>, %arg4: memref<16x32xf32, #tpu.memory_space<vmem>>) attributes {dimension_semantics = [#tpu.dimension_semantics<parallel>], iteration_bounds = array<i64: 1>, scalar_prefetch = 0 : i64, scratch_operands = 0 : i64, tpu.core_type = #tpu.core_type<tc>, window_params = [{transform_indices = @transform_0, window_bounds = array<i64: 144, 32>}, {pipeline_mode = #tpu.pipeline_mode<synchronous>, transform_indices = @transform_1, window_bounds = array<i64: 16, 144>}, {pipeline_mode = #tpu.pipeline_mode<synchronous>, transform_indices = @transform_2, window_bounds = array<i64: 16, 1>}, {transform_indices = @transform_3, window_bounds = array<i64: 16, 32>}]} {
    %c0 = arith.constant 0 : index
    %c0_0 = arith.constant 0 : index
    %0 = vector.load %arg2[%c0, %c0_0] : memref<16x144xbf16, #tpu.memory_space<vmem>>, vector<16x144xbf16>
    %c0_1 = arith.constant 0 : index
    %c0_2 = arith.constant 0 : index
    %1 = vector.load %arg1[%c0_1, %c0_2] : memref<144x32xbf16, #tpu.memory_space<vmem>>, vector<144x32xbf16>
    %cst = arith.constant dense<0.000000e+00> : vector<16x32xf32>
    %2 = tpu.matmul %0, %1, %cst {dimension_numbers = #tpu.dot_dimension_numbers<[1], [0], [0], [1], [0, 0, 1, 1], [], []>} : vector<16x144xbf16>, vector<144x32xbf16>, vector<16x32xf32> -> vector<16x32xf32>
    %c0_3 = arith.constant 0 : index
    %c0_4 = arith.constant 0 : index
    %3 = vector.load %arg3[%c0_3, %c0_4] : memref<16x1xf32, #tpu.memory_space<vmem>>, vector<16x1xf32>
    %4 = vector.broadcast %3 : vector<16x1xf32> to vector<16x32xf32>
    %5 = arith.addf %2, %4 : vector<16x32xf32>
    %cst_5 = arith.constant 0.000000e+00 : f32
    %6 = vector.broadcast %cst_5 : f32 to vector<16x32xf32>
    %7 = arith.maximumf %5, %6 : vector<16x32xf32>
    %c0_6 = arith.constant 0 : index
    %c0_7 = arith.constant 0 : index
    %8 = vector.load %arg4[%c0_6, %c0_7] : memref<16x32xf32, #tpu.memory_space<vmem>>, vector<16x32xf32>
    tpu.vector_store %arg4[%c0_6, %c0_7], %7 {strides = array<i32>} : memref<16x32xf32, #tpu.memory_space<vmem>>, vector<16x32xf32>,
    return
  }
  func.func @transform_0(%arg0: i32) -> (i32, i32) {
    %c0_i32 = arith.constant 0 : i32
    %c0_i32_0 = arith.constant 0 : i32
    return %c0_i32, %arg0 : i32, i32
  }
  func.func @transform_1(%arg0: i32) -> (i32, i32) {
    %c0_i32 = arith.constant 0 : i32
    %c0_i32_0 = arith.constant 0 : i32
    %c0_i32_1 = arith.constant 0 : i32
    return %c0_i32, %c0_i32_0 : i32, i32
  }
  func.func @transform_2(%arg0: i32) -> (i32, i32) {
    %c0_i32 = arith.constant 0 : i32
    %c0_i32_0 = arith.constant 0 : i32
    %c0_i32_1 = arith.constant 0 : i32
    return %c0_i32, %c0_i32_0 : i32, i32
  }
  func.func @transform_3(%arg0: i32) -> (i32, i32) {
    %c0_i32 = arith.constant 0 : i32
    %c0_i32_0 = arith.constant 0 : i32
    return %c0_i32, %arg0 : i32, i32
  }
}

module attributes {stable_mosaic.version = 11 : i64} {
  func.func @_rpn_headT_kernel(%arg0: i32, %arg1: memref<144x384xbf16, #tpu.memory_space<vmem>>, %arg2: memref<16x144xbf16, #tpu.memory_space<vmem>>, %arg3: memref<16x1xf32, #tpu.memory_space<vmem>>, %arg4: memref<15x16xbf16, #tpu.memory_space<vmem>>, %arg5: memref<15x1xf32, #tpu.memory_space<vmem>>, %arg6: memref<15x384xf32, #tpu.memory_space<vmem>>) attributes {dimension_semantics = [#tpu.dimension_semantics<parallel>], iteration_bounds = array<i64: 2>, scalar_prefetch = 0 : i64, scratch_operands = 0 : i64, tpu.core_type = #tpu.core_type<tc>, window_params = [{transform_indices = @transform_0, window_bounds = array<i64: 144, 384>}, {pipeline_mode = #tpu.pipeline_mode<synchronous>, transform_indices = @transform_1, window_bounds = array<i64: 16, 144>}, {pipeline_mode = #tpu.pipeline_mode<synchronous>, transform_indices = @transform_2, window_bounds = array<i64: 16, 1>}, {pipeline_mode = #tpu.pipeline_mode<synchronous>, transform_indices = @transform_3, window_bounds = array<i64: 15, 16>}, {pipeline_mode = #tpu.pipeline_mode<synchronous>, transform_indices = @transform_4, window_bounds = array<i64: 15, 1>}, {transform_indices = @transform_5, window_bounds = array<i64: 15, 384>}]} {
    %c0 = arith.constant 0 : index
    %c0_0 = arith.constant 0 : index
    %0 = vector.load %arg2[%c0, %c0_0] : memref<16x144xbf16, #tpu.memory_space<vmem>>, vector<16x144xbf16>
    %c0_1 = arith.constant 0 : index
    %c0_2 = arith.constant 0 : index
    %1 = vector.load %arg1[%c0_1, %c0_2] : memref<144x384xbf16, #tpu.memory_space<vmem>>, vector<144x384xbf16>
    %cst = arith.constant dense<0.000000e+00> : vector<16x384xf32>
    %2 = tpu.matmul %0, %1, %cst {dimension_numbers = #tpu.dot_dimension_numbers<[1], [0], [0], [1], [0, 0, 1, 1], [], []>} : vector<16x144xbf16>, vector<144x384xbf16>, vector<16x384xf32> -> vector<16x384xf32>
    %c0_3 = arith.constant 0 : index
    %c0_4 = arith.constant 0 : index
    %3 = vector.load %arg3[%c0_3, %c0_4] : memref<16x1xf32, #tpu.memory_space<vmem>>, vector<16x1xf32>
    %4 = vector.broadcast %3 : vector<16x1xf32> to vector<16x384xf32>
    %5 = arith.addf %2, %4 : vector<16x384xf32>
    %cst_5 = arith.constant 0.000000e+00 : f32
    %6 = vector.broadcast %cst_5 : f32 to vector<16x384xf32>
    %7 = arith.maximumf %5, %6 : vector<16x384xf32>
    %c0_6 = arith.constant 0 : index
    %c0_7 = arith.constant 0 : index
    %8 = vector.load %arg4[%c0_6, %c0_7] : memref<15x16xbf16, #tpu.memory_space<vmem>>, vector<15x16xbf16>
    %9 = arith.truncf %7 : vector<16x384xf32> to vector<16x384xbf16>
    %cst_8 = arith.constant dense<0.000000e+00> : vector<15x384xf32>
    %10 = tpu.matmul %8, %9, %cst_8 {dimension_numbers = #tpu.dot_dimension_numbers<[1], [0], [0], [1], [0, 0, 1, 1], [], []>} : vector<15x16xbf16>, vector<16x384xbf16>, vector<15x384xf32> -> vector<15x384xf32>
    %c0_9 = arith.constant 0 : index
    %c0_10 = arith.constant 0 : index
    %11 = vector.load %arg5[%c0_9, %c0_10] : memref<15x1xf32, #tpu.memory_space<vmem>>, vector<15x1xf32>
    %12 = vector.broadcast %11 : vector<15x1xf32> to vector<15x384xf32>
    %13 = arith.addf %10, %12 : vector<15x384xf32>
    %c0_11 = arith.constant 0 : index
    %c0_12 = arith.constant 0 : index
    %14 = vector.load %arg6[%c0_11, %c0_12] : memref<15x384xf32, #tpu.memory_space<vmem>>, vector<15x384xf32>
    tpu.vector_store %arg6[%c0_11, %c0_12], %13 {strides = array<i32>} : memref<15x384xf32, #tpu.memory_space<vmem>>, vector<15x384xf32>,
    return
  }
  func.func @transform_0(%arg0: i32) -> (i32, i32) {
    %c0_i32 = arith.constant 0 : i32
    %c0_i32_0 = arith.constant 0 : i32
    return %c0_i32, %arg0 : i32, i32
  }
  func.func @transform_1(%arg0: i32) -> (i32, i32) {
    %c0_i32 = arith.constant 0 : i32
    %c0_i32_0 = arith.constant 0 : i32
    %c0_i32_1 = arith.constant 0 : i32
    return %c0_i32, %c0_i32_0 : i32, i32
  }
  func.func @transform_2(%arg0: i32) -> (i32, i32) {
    %c0_i32 = arith.constant 0 : i32
    %c0_i32_0 = arith.constant 0 : i32
    %c0_i32_1 = arith.constant 0 : i32
    return %c0_i32, %c0_i32_0 : i32, i32
  }
  func.func @transform_3(%arg0: i32) -> (i32, i32) {
    %c0_i32 = arith.constant 0 : i32
    %c0_i32_0 = arith.constant 0 : i32
    %c0_i32_1 = arith.constant 0 : i32
    return %c0_i32, %c0_i32_0 : i32, i32
  }
  func.func @transform_4(%arg0: i32) -> (i32, i32) {
    %c0_i32 = arith.constant 0 : i32
    %c0_i32_0 = arith.constant 0 : i32
    %c0_i32_1 = arith.constant 0 : i32
    return %c0_i32, %c0_i32_0 : i32, i32
  }
  func.func @transform_5(%arg0: i32) -> (i32, i32) {
    %c0_i32 = arith.constant 0 : i32
    %c0_i32_0 = arith.constant 0 : i32
    return %c0_i32, %arg0 : i32, i32
  }
}

</mosaic_0001>

<bundles_post_ra>
// kernel: graphable_forward.4
= control target key start
LH: loop header
LB: loop body
LE: loop exit
PB: predicated region body
PF: predicated region fallthrough
CT: control target
= control target key end

     0   :  { %s513_s12 = smov 0   ;;  %s515_s13 = smov 0   ;;  %s586_s0 = inlined_call_operand.vmem [shape: bf16[27,512], index: 0, kind: input, shape index: {}]   ;;  %s587_s1 = inlined_call_operand.vmem [shape: bf16[16,27], index: 1, kind: input, shape index: {}]   ;;  %s588_s2 = inlined_call_operand.vmem [shape: f32[16,1], index: 2, kind: input, shape index: {}]   ;;  %s589_s3 = inlined_call_operand.vmem [shape: f32[16,512], index: 3, kind: output, shape index: {}]  }
   0x1   :  { %s517_s14 = smov 0  }
   0x2 LB: > { %s410_s15 = sadd.s32 4294967295, %s489_s14   ;;  %s530_s16 = sadd.s32 1, %s489_s14   ;;  %s489_s14 = sphi %s517_s14, %s593_s14   ;;  %s485_s13 = sphi %s515_s13, %s592_s13   ;;  %s481_s12 = sphi %s513_s12, %s591_s12  }
   0x3   : > { %s17_s17 = ssub.s32 %s489_s14, %s530_s16  ;;  %s20_s18 = sadd.s32 1, %s485_s13 }
   0x4   : > { %p18_p0 = scmp.eq.s32.totalorder %s17_s17, 0  ;;  %p27_p1 = scmp.ne.s32.totalorder %s485_s13, %s481_s12 }
   0x5   : > { %p28_p2 = scmp.eq.s32.totalorder %s489_s14, 0  ;;  %p99_p3 = scmp.eq.s32.totalorder %s410_s15, 1 }
   0x6   : > { %s541_s19 = scalar_select %p18_p0, %s485_s13, %s20_s18  }
   0x7   : > { %p29_p4 = por %p28_p2, %p27_p1  ;;  %p543_p5 = por %p99_p3, %p27_p1 }
   0x8   : > { %p413_p6 = scmp.ge.s32.totalorder %s489_s14, 2 }
   0xa   : > { %127 = sbr.rel (%p413_p6) target bundleno = 24 (0x18), region = 24 }
  0x11   : > { %130 = sbr.rel (!%p29_p4) target bundleno = 24 (0x18), region = 28  ;;  %s132_s21 = sand.u32 (%p29_p4), 1, %s485_s13  }
  0x12   : > { %s431_s22 = sshll.u32 (%p29_p4), %s489_s14, 3  ;;  %s414_s23 = sshll.u32 (%p29_p4), %s132_s21, 5 }
  0x13   : > { %s137_s26 = scalar_lea.vmem (%p29_p4), %s586_s0, %s431_s22  ;;  %s134_s27 = scalar_lea.vmem (%p29_p4), [#allocation2], %s414_s23 }
  0x14   : > { %v171_v0 = vld [vmem:[%s137_s26] sm:$0xff] (%p29_p4)  ;;  %v173_v1 = vld [vmem:[%s137_s26 + $0x10] sm:$0xff] (%p29_p4) }
  0x15   : > { %v175_v2 = vld [vmem:[%s137_s26 + $0x20] sm:$0xff] (%p29_p4)  ;;  %172 = vst [vmem:[%s134_s27] sm:$0xff] (%p29_p4), %v171_v0  ;;  %174 = vst [vmem:[%s134_s27 + $0x8] sm:$0xff] (%p29_p4), %v173_v1  ;;  %v177_v3 = vld [vmem:[%s137_s26 + $0x30] sm:$0xff] (%p29_p4) }
  0x16   : > { %176 = vst [vmem:[%s134_s27 + $0x10] sm:$0xff] (%p29_p4), %v175_v2  ;;  %178 = vst [vmem:[%s134_s27 + $0x18] sm:$0xff] (%p29_p4), %v177_v3 }
  0x18 PF: > { %p417_p7 = scmp.ge.s32.totalorder %s489_s14, 1  ;;  %p183_p8 = scmp.lt.s32.totalorder %s489_s14, 3 }
  0x1a   : > { %p184_p9 = pnand %p417_p7, %p183_p8 }
  0x1b   : > { %s190_s28 = sand.u32 (!%p184_p9), 1, %s481_s12   ;;  %vm260_vm0 = vcmask (!%p184_p9), 1044480   ;;  %vm261_vm1 = vcmask (!%p184_p9), 1045504   ;;  %v491_v4 = vmov (!%p184_p9), 65535   ;;  %v492_v6 = vmov (!%p184_p9), 0   ;;  %v221_v7 = vld [vmem:[%s588_s2] sm:$0xff] (!%p184_p9) }
  0x1c   : > { %187 = sbr.rel (%p184_p9) target bundleno = 267 (0x10b), region = 66  ;;  %s556_s29 = sshll.u32 (!%p184_p9), %s190_s28, 5  ;;  %v262_v5 = vsel (!%p184_p9), %vm260_vm0, 4294967295, %v491_v4  ;;  %302 = vmatprep.mubr.bf16.mxu0 (!%p184_p9), %v492_v6  ;;  %459 = vset.pattern.permute.xlu0 (!%p184_p9), %v492_v6  ;;  %v222_v8 = vld [vmem:[%s588_s2 + $0x8] sm:$0xff] (!%p184_p9)  ;;  %v466_v16 = vld [vmem:[%s587_s1] sm:$0xff] (!%p184_p9)   ;;  %vm256_vm2 = vcmask (!%p184_p9), 220160  }
  0x1d   : > { %s192_s7 = scalar_lea.vmem (!%p184_p9), [#allocation2], %s556_s29  ;;  %225 = vperm.xlu0 (!%p184_p9), %459, %v221_v7   ;;  %v263_v11 = vsel (!%p184_p9), %vm261_vm1, %v262_v5, 0  ;;  %s211_s10 = scalar_lea.vmem (!%p184_p9), [#allocation3], %s556_s29 }
  0x1e   : > { %v460_v9 = vld [vmem:[%s192_s7 + $0x4] ss:$8 sps:$4 sm:$0xff] (!%p184_p9)   ;;  %v462_v10 = vld [vmem:[%s192_s7] ss:$8 sps:$4 sm:$0xff] (!%p184_p9)  }
  0x1f   : > { %270 = vmatprep.subr.bf16.mxu0 (!%p184_p9), %v460_v9  ;;  %v463_v12 = vld [vmem:[%s192_s7 + $0x14] ss:$8 sps:$4 sm:$0x3f] (!%p184_p9)   ;;  %v465_v13 = vld [vmem:[%s192_s7 + $0x10] ss:$8 sps:$4 sm:$0x3f] (!%p184_p9)  }
  0x20   : > { %271 = vmatpush1.bf16.msra.mxu0 (!%p184_p9), %v462_v10  ;;  %v268_v14 = vand.u32 (!%p184_p9), %v463_v12, %v263_v11  ;;  %v265_v15 = vand.u32 (!%p184_p9), %v465_v13, %v263_v11 }
  0x21   : > { %230 = vperm.xlu0 (!%p184_p9), %459, %v222_v8  }
  0x22   : > { %272 = vmatprep.subr.bf16.mxu0 (!%p184_p9), %v268_v14 }
  0x23   : > { %s432_s11 = sshll.u32 (%p543_p5), %s410_s15, 4 }
  0x24   : > { %273 = vmatpush1.bf16.msra.mxu0 %v265_v15  ;;  %s330_s18 = scalar_lea.vmem (%p543_p5), %s589_s3, %s432_s11 }
  0x27   : > { %425 = vmatmul.mubr.msk.bf16.vlgmr.msra.gmra.mrb[0].mxu0 %vm256_vm2, %v466_v16 }
  0x9c   : > { %v226_v17 = vpop.permute.xlu0 %225 }
  0xa0   : > { %v231_v21 = vpop.permute.xlu0 %230 }
  0xfa   : > { %v304_v18 = vpop.f32.mrb[0].mxu0 }
  0xfb   : > { %v305_v19 = vadd.f32 %v304_v18, %v226_v17  ;;  %v306_v20 = vpop.f32.mrb[1].mxu0 }
  0xfc   : > { %v307_v22 = vadd.f32 %v306_v20, %v226_v17  ;;  %v308_v23 = vpop.f32.mrb[2].mxu0  ;;  %327 = sbr.rel (!%p543_p5) target bundleno = 267 (0x10b), region = 74 }
  0xfd   : > { %v313_v24 = vmax.f32 %v305_v19, 0.0  ;;  %v309_v25 = vadd.f32 %v308_v23, %v231_v21  ;;  %v310_v26 = vpop.f32.mrb[3].mxu0 }
  0xfe   : > { %v314_v27 = vmax.f32 %v307_v22, 0.0  ;;  %v311_v28 = vadd.f32 %v310_v26, %v231_v21 }
  0xff   : > { %317 = vst [vmem:[%s211_s10] sm:$0xff] %v313_v24  ;;  %v315_v29 = vmax.f32 %v309_v25, 0.0 }
 0x100   : > { %318 = vst [vmem:[%s211_s10 + $0x8] sm:$0xff] %v314_v27  ;;  %v316_v30 = vmax.f32 %v311_v28, 0.0 }
 0x101   : > { %319 = vst [vmem:[%s211_s10 + $0x10] sm:$0xff] %v315_v29 }
 0x102   : > { %320 = vst [vmem:[%s211_s10 + $0x18] sm:$0xff] %v316_v30 }
 0x106   : > { %v343_v31 = vld [vmem:[%s211_s10] sm:$0xff] }
 0x107   : > { %v345_v32 = vld [vmem:[%s211_s10 + $0x8] sm:$0xff]  ;;  %344 = vst [vmem:[%s330_s18] sm:$0xff] %v343_v31 }
 0x108   : > { %v347_v33 = vld [vmem:[%s211_s10 + $0x10] sm:$0xff]  ;;  %346 = vst [vmem:[%s330_s18 + $0x8] sm:$0xff] %v345_v32 }
 0x109   : > { %v349_v34 = vld [vmem:[%s211_s10 + $0x18] sm:$0xff]  ;;  %348 = vst [vmem:[%s330_s18 + $0x20] sm:$0xff] %v347_v33 }
 0x10a   : > { %350 = vst [vmem:[%s330_s18 + $0x28] sm:$0xff] %v349_v34 }
 0x10b PF: > { %p10_p10 = scmp.ge.s32.totalorder %s530_s16, 4   ;;  %s591_s12 = smov %s485_s13 }
 0x10c   : > { %s592_s13 = smov %s541_s19  ;;  %s593_s14 = smov %s530_s16 }
 0x10d   :  { %12 = sbr.rel (!%p10_p10) target bundleno = 2 (0x2), region = 128 }

// kernel: graphable_forward.5
= control target key start
LH: loop header
LB: loop body
LE: loop exit
PB: predicated region body
PF: predicated region fallthrough
CT: control target
= control target key end

     0   :  { %v189_v0 = vmov 0   ;;  %vm110_vm0 = vcmask 130048   ;;  %s255_s0 = inlined_call_operand.vmem [shape: bf16[144,128], index: 0, kind: input, shape index: {}]   ;;  %s256_s1 = inlined_call_operand.vmem [shape: bf16[16,144], index: 1, kind: input, shape index: {}]   ;;  %s257_s2 = inlined_call_operand.vmem [shape: f32[16,1], index: 2, kind: input, shape index: {}]   ;;  %s258_s3 = inlined_call_operand.vmem [shape: f32[16,128], index: 3, kind: output, shape index: {}]  }
   0x1   :  { %114 = vmatprep.subr.bf16.mxu0 %v189_v0  ;;  %v177_v1 = vld [vmem:[%s255_s0] sm:$0xff]   ;;  %176 = vset.pattern.permute.xlu0 %v189_v0  ;;  %v178_v2 = vld [vmem:[%s255_s0 + $0x8] sm:$0xff]   ;;  %v179_v3 = vld [vmem:[%s255_s0 + $0x10] sm:$0xff]  }
   0x2   :  { %115 = vmatpush1.bf16.msra.mxu0 %v177_v1  ;;  %v180_v4 = vld [vmem:[%s255_s0 + $0x18] sm:$0xff]   ;;  %v188_v5 = vld [vmem:[%s256_s1 + $0x4] ss:$8 sps:$4 sm:$0xff]   ;;  %v183_v10 = vld [vmem:[%s255_s0 + $0x30] sm:$0xff]  }
   0x3   :  { %116 = vmatprep.subr.bf16.mxu0 %v189_v0  ;;  %v35_v6 = vld [vmem:[%s257_s2] sm:$0xff]  ;;  %174 = vmatprep.mubr.msk.bf16.mxu0 %vm110_vm0, %v188_v5  ;;  %v36_v7 = vld [vmem:[%s257_s2 + $0x8] sm:$0xff]  ;;  %v184_v11 = vld [vmem:[%s255_s0 + $0x38] sm:$0xff]  }
   0x4   :  { %39 = vperm.xlu0 %176, %v35_v6   ;;  %v181_v8 = vld [vmem:[%s255_s0 + $0x20] sm:$0xff]   ;;  %v182_v9 = vld [vmem:[%s255_s0 + $0x28] sm:$0xff]  }
   0x5   :  { %v185_v12 = vld [vmem:[%s255_s0 + $0x40] sm:$0xff]  }
   0x6   :  { %117 = vmatpush1.bf16.msra.mxu0 %v178_v2  ;;  %v186_v13 = vld [vmem:[%s256_s1] ss:$8 sps:$4 sm:$0xff]  }
   0x7   :  { %118 = vmatprep.subr.bf16.mxu0 %v189_v0 }
   0x8   :  { %44 = vperm.xlu0 %176, %v36_v7  }
   0xa   :  { %119 = vmatpush1.bf16.msra.mxu0 %v179_v3 }
   0xb   :  { %120 = vmatprep.subr.bf16.mxu0 %v189_v0 }
   0xe   :  { %121 = vmatpush1.bf16.msra.mxu0 %v180_v4 }
   0xf   :  { %122 = vmatprep.subr.bf16.mxu0 %v189_v0 }
  0x12   :  { %123 = vmatpush1.bf16.msra.mxu0 %v181_v8 }
  0x13   :  { %124 = vmatprep.subr.bf16.mxu0 %v189_v0 }
  0x16   :  { %125 = vmatpush1.bf16.msra.mxu0 %v182_v9 }
  0x17   :  { %126 = vmatprep.subr.bf16.mxu0 %v189_v0 }
  0x1a   :  { %127 = vmatpush1.bf16.msra.mxu0 %v183_v10 }
  0x1b   :  { %128 = vmatprep.subr.bf16.mxu0 %v189_v0 }
  0x1e   :  { %129 = vmatpush1.bf16.msra.mxu0 %v184_v11 }
  0x1f   :  { %130 = vmatprep.subr.bf16.mxu0 %v189_v0 }
  0x22   :  { %131 = vmatpush1.bf16.msra.mxu0 %v185_v12 }
  0x25   :  { %147 = vmatmul.mubr.bf16.vlgmr.msra.gmra.mrb[0].mxu0 %v186_v13 }
  0x83   :  { %v40_v14 = vpop.permute.xlu0 %39 }
  0x87   :  { %v45_v18 = vpop.permute.xlu0 %44 }
  0xf8   :  { %v148_v15 = vpop.f32.mrb[0].mxu0 }
  0xf9   :  { %v149_v16 = vadd.f32 %v148_v15, %v40_v14  ;;  %v150_v17 = vpop.f32.mrb[1].mxu0 }
  0xfa   :  { %v151_v19 = vpop.f32.mrb[2].mxu0 }
  0xfb   :  { %v155_v20 = vmax.f32 %v149_v16, 0.0  ;;  %v152_v21 = vadd.f32 %v151_v19, %v45_v18  ;;  %v153_v22 = vpop.f32.mrb[3].mxu0 }
  0xfd   :  { %157 = vst [vmem:[%s258_s3] sm:$0xff] %v155_v20  ;;  %v156_v23 = vmax.f32 %v152_v21, 0.0 }
  0xff   :  { %158 = vst [vmem:[%s258_s3 + $0x8] sm:$0xff] %v156_v23 }

// kernel: graphable_forward.6
= control target key start
LH: loop header
LB: loop body
LE: loop exit
PB: predicated region body
PF: predicated region fallthrough
CT: control target
= control target key end

     0   :  { %v190_v0 = vmov 0   ;;  %vm110_vm0 = vcmask 130048   ;;  %vm157_vm1 = vcmask 261120   ;;  %s256_s0 = inlined_call_operand.vmem [shape: bf16[144,32], index: 0, kind: input, shape index: {}]   ;;  %s257_s1 = inlined_call_operand.vmem [shape: bf16[16,144], index: 1, kind: input, shape index: {}]   ;;  %s258_s2 = inlined_call_operand.vmem [shape: f32[16,1], index: 2, kind: input, shape index: {}]   ;;  %s259_s3 = inlined_call_operand.vmem [shape: f32[16,32], index: 3, kind: output, shape index: {}]  }
   0x1   :  { %114 = vmatprep.subr.bf16.mxu0 %v190_v0  ;;  %v178_v1 = vld [vmem:[%s256_s0] sm:$0xff]   ;;  %177 = vset.pattern.permute.xlu0 %v190_v0  ;;  %v179_v2 = vld [vmem:[%s256_s0 + $0x8] sm:$0xff]   ;;  %v180_v3 = vld [vmem:[%s256_s0 + $0x10] sm:$0xff]  }
   0x2   :  { %115 = vmatpush1.bf16.msra.mxu0 %v178_v1  ;;  %v181_v4 = vld [vmem:[%s256_s0 + $0x18] sm:$0xff]   ;;  %v189_v5 = vld [vmem:[%s257_s1 + $0x4] ss:$8 sps:$4 sm:$0xff]   ;;  %v184_v10 = vld [vmem:[%s256_s0 + $0x30] sm:$0xff]  }
   0x3   :  { %116 = vmatprep.subr.bf16.mxu0 %v190_v0  ;;  %v35_v6 = vld [vmem:[%s258_s2] sm:$0xff]  ;;  %175 = vmatprep.mubr.msk.bf16.mxu0 %vm110_vm0, %v189_v5  ;;  %v36_v7 = vld [vmem:[%s258_s2 + $0x8] sm:$0xff]  ;;  %v185_v11 = vld [vmem:[%s256_s0 + $0x38] sm:$0xff]  }
   0x4   :  { %39 = vperm.xlu0 %177, %v35_v6   ;;  %v182_v8 = vld [vmem:[%s256_s0 + $0x20] sm:$0xff]   ;;  %v183_v9 = vld [vmem:[%s256_s0 + $0x28] sm:$0xff]  }
   0x5   :  { %v186_v12 = vld [vmem:[%s256_s0 + $0x40] sm:$0xff]  }
   0x6   :  { %117 = vmatpush1.bf16.msra.mxu0 %v179_v2  ;;  %v187_v13 = vld [vmem:[%s257_s1] ss:$8 sps:$4 sm:$0xff]  }
   0x7   :  { %118 = vmatprep.subr.bf16.mxu0 %v190_v0 }
   0x8   :  { %44 = vperm.xlu0 %177, %v36_v7  }
   0xa   :  { %119 = vmatpush1.bf16.msra.mxu0 %v180_v3 }
   0xb   :  { %120 = vmatprep.subr.bf16.mxu0 %v190_v0 }
   0xe   :  { %121 = vmatpush1.bf16.msra.mxu0 %v181_v4 }
   0xf   :  { %122 = vmatprep.subr.bf16.mxu0 %v190_v0 }
  0x12   :  { %123 = vmatpush1.bf16.msra.mxu0 %v182_v8 }
  0x13   :  { %124 = vmatprep.subr.bf16.mxu0 %v190_v0 }
  0x16   :  { %125 = vmatpush1.bf16.msra.mxu0 %v183_v9 }
  0x17   :  { %126 = vmatprep.subr.bf16.mxu0 %v190_v0 }
  0x1a   :  { %127 = vmatpush1.bf16.msra.mxu0 %v184_v10 }
  0x1b   :  { %128 = vmatprep.subr.bf16.mxu0 %v190_v0 }
  0x1e   :  { %129 = vmatpush1.bf16.msra.mxu0 %v185_v11 }
  0x1f   :  { %130 = vmatprep.subr.bf16.mxu0 %v190_v0 }
  0x22   :  { %131 = vmatpush1.bf16.msra.mxu0 %v186_v12 }
  0x25   :  { %147 = vmatmul.mubr.bf16.vlgmr.msra.gmra.mrb[0].mxu0 %v187_v13 }
  0x83   :  { %v40_v14 = vpop.permute.xlu0 %39 }
  0x87   :  { %v45_v18 = vpop.permute.xlu0 %44 }
  0xf8   :  { %v148_v15 = vpop.f32.mrb[0].mxu0 }
  0xf9   :  { %v149_v16 = vadd.f32 %v148_v15, %v40_v14  ;;  %v150_v17 = vpop.f32.mrb[1].mxu0 }
  0xfa   :  { %v151_v19 = vpop.f32.mrb[2].mxu0 }
  0xfb   :  { %v155_v20 = vmax.f32 %v149_v16, 0.0  ;;  %v152_v21 = vadd.f32 %v151_v19, %v45_v18  ;;  %v153_v22 = vpop.f32.mrb[3].mxu0 }
  0xfd   :  { %158 = vst.msk [vmem:[%s259_s3] sm:$0xff] %vm157_vm1, %v155_v20  ;;  %v156_v23 = vmax.f32 %v152_v21, 0.0 }
  0xff   :  { %159 = vst.msk [vmem:[%s259_s3 + $0x8] sm:$0xff] %vm157_vm1, %v156_v23 }

// kernel: graphable_forward.7
= control target key start
LH: loop header
LB: loop body
LE: loop exit
PB: predicated region body
PF: predicated region fallthrough
CT: control target
= control target key end

     0   :  { %s1048_s18 = smov 0   ;;  %s1050_s19 = smov 0   ;;  %s1254_s0 = inlined_call_operand.vmem [shape: bf16[144,672], index: 0, kind: input, shape index: {}]   ;;  %s1255_s1 = inlined_call_operand.vmem [shape: bf16[16,144], index: 1, kind: input, shape index: {}]   ;;  %s1256_s2 = inlined_call_operand.vmem [shape: f32[16,1], index: 2, kind: input, shape index: {}]   ;;  %s1257_s3 = inlined_call_operand.vmem [shape: bf16[15,16], index: 3, kind: input, shape index: {}]   ;;  %s1258_s4 = inlined_call_operand.vmem [shape: f32[15,1], index: 4, kind: input, shape index: {}]   ;;  %s1259_s5 = inlined_call_operand.vmem [shape: f32[15,672], index: 5, kind: output, shape index: {}]  }
   0x1   :  { %s1052_s20 = smov 0  }
   0x2 LB: > { %s830_s21 = sadd.s32 4294967295, %s1013_s20   ;;  %s1065_s22 = sadd.s32 1, %s1013_s20   ;;  %s1013_s20 = sphi %s1052_s20, %s1263_s20   ;;  %s1009_s19 = sphi %s1050_s19, %s1262_s19   ;;  %s1005_s18 = sphi %s1048_s18, %s1261_s18  }
   0x3   : > { %s19_s23 = ssub.s32 %s1013_s20, %s1065_s22  ;;  %s22_s24 = sadd.s32 1, %s1009_s19 }
   0x4   : > { %p20_p0 = scmp.eq.s32.totalorder %s19_s23, 0  ;;  %p29_p1 = scmp.ne.s32.totalorder %s1009_s19, %s1005_s18 }
   0x5   : > { %p30_p2 = scmp.eq.s32.totalorder %s1013_s20, 0  ;;  %p143_p3 = scmp.eq.s32.totalorder %s830_s21, 1 }
   0x6   : > { %s1076_s25 = scalar_select %p20_p0, %s1009_s19, %s22_s24  }
   0x7   : > { %p31_p4 = por %p30_p2, %p29_p1  ;;  %p1078_p5 = por %p143_p3, %p29_p1 }
   0x8   : > { %p833_p6 = scmp.ge.s32.totalorder %s1013_s20, 2 }
   0xa   : > { %177 = sbr.rel (%p833_p6) target bundleno = 43 (0x2b), region = 32 }
  0x11   : > { %180 = sbr.rel (!%p31_p4) target bundleno = 43 (0x2b), region = 36  ;;  %s182_s27 = sand.u32 (%p31_p4), 1, %s1009_s19  }
  0x12   : > { %s909_s28 = smul.u32 (%p31_p4), 12, %s1013_s20 }
  0x13   : > { %s919_s29 = smul.u32 (%p31_p4), 216, %s182_s27 }
  0x14   : > { %s1088_s7 = scalar_lea.vmem (%p31_p4), %s1254_s0, %s909_s28 }
  0x15   : > { %v202_v0 = vld [vmem:[%s1088_s7] sm:$0xff] (%p31_p4)  ;;  %v204_v1 = vld [vmem:[%s1088_s7 + $0x18] sm:$0xff] (%p31_p4)  ;;  %v206_v2 = vld [vmem:[%s1088_s7 + $0x30] sm:$0xff] (%p31_p4)  ;;  %s1093_s8 = scalar_lea.vmem (%p31_p4), [#allocation2], %s919_s29 }
  0x16   : > { %203 = vst [vmem:[%s1093_s8] sm:$0xff] (%p31_p4), %v202_v0  ;;  %205 = vst [vmem:[%s1093_s8 + $0xc] sm:$0xff] (%p31_p4), %v204_v1  ;;  %v208_v3 = vld [vmem:[%s1088_s7 + $0x48] sm:$0xff] (%p31_p4)  ;;  %v210_v4 = vld [vmem:[%s1088_s7 + $0x60] sm:$0xff] (%p31_p4) }
  0x17   : > { %207 = vst [vmem:[%s1093_s8 + $0x18] sm:$0xff] (%p31_p4), %v206_v2  ;;  %v212_v5 = vld [vmem:[%s1088_s7 + $0x78] sm:$0xff] (%p31_p4)  ;;  %209 = vst [vmem:[%s1093_s8 + $0x24] sm:$0xff] (%p31_p4), %v208_v3  ;;  %v214_v6 = vld [vmem:[%s1088_s7 + $0x90] sm:$0xff] (%p31_p4) }
  0x18   : > { %211 = vst [vmem:[%s1093_s8 + $0x30] sm:$0xff] %v210_v4  ;;  %213 = vst [vmem:[%s1093_s8 + $0x3c] sm:$0xff] %v212_v5  ;;  %v216_v7 = vld [vmem:[%s1088_s7 + $0xa8] sm:$0xff]  ;;  %v218_v8 = vld [vmem:[%s1088_s7 + $0xc0] sm:$0xff] }
  0x19   : > { %215 = vst [vmem:[%s1093_s8 + $0x48] sm:$0xff] %v214_v6  ;;  %217 = vst [vmem:[%s1093_s8 + $0x54] sm:$0xff] %v216_v7  ;;  %v220_v9 = vld [vmem:[%s1088_s7 + $0xd8] sm:$0xff]  ;;  %v222_v10 = vld [vmem:[%s1088_s7 + $0xf0] sm:$0xff] }
  0x1a   : > { %219 = vst [vmem:[%s1093_s8 + $0x60] sm:$0xff] %v218_v8  ;;  %v224_v11 = vld [vmem:[%s1088_s7 + $0x108] sm:$0xff]  ;;  %221 = vst [vmem:[%s1093_s8 + $0x6c] sm:$0xff] %v220_v9  ;;  %v226_v12 = vld [vmem:[%s1088_s7 + $0x120] sm:$0xff] }
  0x1b   : > { %223 = vst [vmem:[%s1093_s8 + $0x78] sm:$0xff] %v222_v10  ;;  %225 = vst [vmem:[%s1093_s8 + $0x84] sm:$0xff] %v224_v11  ;;  %v228_v13 = vld [vmem:[%s1088_s7 + $0x138] sm:$0xff]  ;;  %v230_v14 = vld [vmem:[%s1088_s7 + $0x150] sm:$0xff] }
  0x1c   : > { %227 = vst [vmem:[%s1093_s8 + $0x90] sm:$0xff] %v226_v12  ;;  %229 = vst [vmem:[%s1093_s8 + $0x9c] sm:$0xff] %v228_v13  ;;  %v232_v15 = vld [vmem:[%s1088_s7 + $0x168] sm:$0xff]  ;;  %v234_v16 = vld [vmem:[%s1088_s7 + $0x180] sm:$0xff] }
  0x1d   : > { %231 = vst [vmem:[%s1093_s8 + $0xa8] sm:$0xff] %v230_v14  ;;  %v236_v17 = vld [vmem:[%s1088_s7 + $0x198] sm:$0xff]  ;;  %233 = vst [vmem:[%s1093_s8 + $0xb4] sm:$0xff] %v232_v15  ;;  %v835_v18 = vld [vmem:[%s1088_s7 + $0x8] sm:$0xf] }
  0x1e   : > { %235 = vst [vmem:[%s1093_s8 + $0xc0] sm:$0xff] %v234_v16  ;;  %237 = vst [vmem:[%s1093_s8 + $0xcc] sm:$0xff] %v236_v17  ;;  %v837_v19 = vld [vmem:[%s1088_s7 + $0x20] sm:$0xf]  ;;  %v839_v20 = vld [vmem:[%s1088_s7 + $0x38] sm:$0xf] }
  0x1f   : > { %836 = vst [vmem:[%s1093_s8 + $0x8] sm:$0xf] %v835_v18  ;;  %838 = vst [vmem:[%s1093_s8 + $0x14] sm:$0xf] %v837_v19  ;;  %v841_v21 = vld [vmem:[%s1088_s7 + $0x50] sm:$0xf] }
  0x20   : > { %840 = vst [vmem:[%s1093_s8 + $0x20] sm:$0xf] %v839_v20  ;;  %v843_v22 = vld [vmem:[%s1088_s7 + $0x68] sm:$0xf]  ;;  %v845_v23 = vld [vmem:[%s1088_s7 + $0x80] sm:$0xf] }
  0x21   : > { %842 = vst [vmem:[%s1093_s8 + $0x2c] sm:$0xf] %v841_v21  ;;  %844 = vst [vmem:[%s1093_s8 + $0x38] sm:$0xf] %v843_v22  ;;  %v847_v24 = vld [vmem:[%s1088_s7 + $0x98] sm:$0xf] }
  0x22   : > { %846 = vst [vmem:[%s1093_s8 + $0x44] sm:$0xf] %v845_v23  ;;  %v849_v25 = vld [vmem:[%s1088_s7 + $0xb0] sm:$0xf]  ;;  %v851_v26 = vld [vmem:[%s1088_s7 + $0xc8] sm:$0xf] }
  0x23   : > { %848 = vst [vmem:[%s1093_s8 + $0x50] sm:$0xf] %v847_v24  ;;  %850 = vst [vmem:[%s1093_s8 + $0x5c] sm:$0xf] %v849_v25  ;;  %v853_v27 = vld [vmem:[%s1088_s7 + $0xe0] sm:$0xf] }
  0x24   : > { %852 = vst [vmem:[%s1093_s8 + $0x68] sm:$0xf] %v851_v26  ;;  %v855_v28 = vld [vmem:[%s1088_s7 + $0xf8] sm:$0xf]  ;;  %v857_v29 = vld [vmem:[%s1088_s7 + $0x110] sm:$0xf] }
  0x25   : > { %854 = vst [vmem:[%s1093_s8 + $0x74] sm:$0xf] %v853_v27  ;;  %856 = vst [vmem:[%s1093_s8 + $0x80] sm:$0xf] %v855_v28  ;;  %v859_v30 = vld [vmem:[%s1088_s7 + $0x128] sm:$0xf] }
  0x26   : > { %858 = vst [vmem:[%s1093_s8 + $0x8c] sm:$0xf] %v857_v29  ;;  %v861_v31 = vld [vmem:[%s1088_s7 + $0x140] sm:$0xf]  ;;  %v863_v32 = vld [vmem:[%s1088_s7 + $0x158] sm:$0xf] }
  0x27   : > { %860 = vst [vmem:[%s1093_s8 + $0x98] sm:$0xf] %v859_v30  ;;  %862 = vst [vmem:[%s1093_s8 + $0xa4] sm:$0xf] %v861_v31  ;;  %v865_v33 = vld [vmem:[%s1088_s7 + $0x170] sm:$0xf] }
  0x28   : > { %864 = vst [vmem:[%s1093_s8 + $0xb0] sm:$0xf] %v863_v32  ;;  %v867_v34 = vld [vmem:[%s1088_s7 + $0x188] sm:$0xf]  ;;  %v869_v35 = vld [vmem:[%s1088_s7 + $0x1a0] sm:$0xf] }
  0x29   : > { %866 = vst [vmem:[%s1093_s8 + $0xbc] sm:$0xf] %v865_v33  ;;  %868 = vst [vmem:[%s1093_s8 + $0xc8] sm:$0xf] %v867_v34 }
  0x2a   : > { %870 = vst [vmem:[%s1093_s8 + $0xd4] sm:$0xf] %v869_v35 }
  0x2b PF: > { %p871_p7 = scmp.ge.s32.totalorder %s1013_s20, 1  ;;  %p285_p8 = scmp.lt.s32.totalorder %s1013_s20, 3 }
  0x2d   : > { %p286_p9 = pnand %p871_p7, %p285_p8 }
  0x2e   : > { %s292_s9 = sand.u32 (!%p286_p9), 1, %s1005_s18   ;;  %v1015_v36 = vmov (!%p286_p9), 0   ;;  %v989_v37 = vld [vmem:[%s1255_s1 + $0x4] ss:$8 sps:$4 sm:$0xff] (!%p286_p9)   ;;  %vm524_vm0 = vcmask (!%p286_p9), 130048   ;;  %v1016_v4 = vmov (!%p286_p9), 0.0  }
  0x2f   : > { %289 = sbr.rel (%p286_p9) target bundleno = 539 (0x21b), region = 62  ;;  %571 = vmatprep.subr.bf16.mxu1 (!%p286_p9), %v1015_v36  ;;  %949 = vset.pattern.permute.xlu0 (!%p286_p9), %v1015_v36  ;;  %v359_v38 = vld [vmem:[%s1256_s2] sm:$0xff] (!%p286_p9)  ;;  %v360_v39 = vld [vmem:[%s1256_s2 + $0x8] sm:$0xff] (!%p286_p9)  ;;  %vm1017_vm1 = vmmov (!%p286_p9), 0  }
  0x30   : > { %s920_s10 = smul.u32 (!%p286_p9), 216, %s292_s9  ;;  %363 = vperm.xlu0 (!%p286_p9), %949, %v359_v38   ;;  %950 = vset.pattern.permute.xlu1 (!%p286_p9), %v1015_v36  ;;  %v987_v3 = vld [vmem:[%s1255_s1] ss:$8 sps:$4 sm:$0xff] (!%p286_p9)  }
  0x31   : > { %902 = vmatprep.mubr.msk.bf16.mxu1 (!%p286_p9), %vm524_vm0, %v989_v37  ;;  %901 = vmatprep.mubr.msk.bf16.mxu0 (!%p286_p9), %vm524_vm0, %v989_v37  ;;  %v623_v5 = vld [vmem:[%s1258_s4] sm:$0xff] (!%p286_p9)  ;;  %v624_v6 = vld [vmem:[%s1258_s4 + $0x8] sm:$0x7f] (!%p286_p9)  ;;  %s921_s8 = smul.u32 (!%p286_p9), 48, %s292_s9 }
  0x32   : > { %s1183_s17 = scalar_lea.vmem (!%p286_p9), [#allocation2], %s920_s10  ;;  %627 = vperm.xlu1 (!%p286_p9), %950, %v623_v5   ;;  %v990_v31 = vld [vmem:[%s1257_s3] sm:$0xff] (!%p286_p9)  }
  0x33   : > { %v951_v40 = vld [vmem:[%s1183_s17 + $0x4] ss:$12 sps:$4 sm:$0xff] (!%p286_p9)   ;;  %v953_v41 = vld [vmem:[%s1183_s17 + $0x8] ss:$12 sps:$4 sm:$0xff] (!%p286_p9)   ;;  %v954_v42 = vld [vmem:[%s1183_s17] ss:$12 sps:$4 sm:$0xff] (!%p286_p9)  }
  0x34   : > { %528 = vmatprep.subr.bf16.mxu0 (!%p286_p9), %v951_v40  ;;  %368 = vperm.xlu0 (!%p286_p9), %949, %v360_v39   ;;  %v955_v43 = vld [vmem:[%s1183_s17 + $0x1c] ss:$12 sps:$4 sm:$0xff] (!%p286_p9)   ;;  %v957_v44 = vld [vmem:[%s1183_s17 + $0x20] ss:$12 sps:$4 sm:$0xff] (!%p286_p9)   ;;  %v958_v45 = vld [vmem:[%s1183_s17 + $0x18] ss:$12 sps:$4 sm:$0xff] (!%p286_p9)  }
  0x35   : > { %572 = vmatpush1.bf16.msra.mxu1 (!%p286_p9), %v953_v41  ;;  %529 = vmatpush1.bf16.msra.mxu0 (!%p286_p9), %v954_v42  ;;  %v959_v46 = vld [vmem:[%s1183_s17 + $0x34] ss:$12 sps:$4 sm:$0xff] (!%p286_p9)   ;;  %v961_v47 = vld [vmem:[%s1183_s17 + $0x38] ss:$12 sps:$4 sm:$0xff] (!%p286_p9)   ;;  %v962_v48 = vld [vmem:[%s1183_s17 + $0x30] ss:$12 sps:$4 sm:$0xff] (!%p286_p9)  }
  0x36   : > { %573 = vmatprep.subr.bf16.mxu1 %v1015_v36  ;;  %530 = vmatprep.subr.bf16.mxu0 %v955_v43  ;;  %v963_v49 = vld [vmem:[%s1183_s17 + $0x4c] ss:$12 sps:$4 sm:$0xff]   ;;  %v965_v50 = vld [vmem:[%s1183_s17 + $0x50] ss:$12 sps:$4 sm:$0xff]   ;;  %v966_v51 = vld [vmem:[%s1183_s17 + $0x48] ss:$12 sps:$4 sm:$0xff]  }
  0x37   : > { %v967_v52 = vld [vmem:[%s1183_s17 + $0x64] ss:$12 sps:$4 sm:$0xff]   ;;  %v969_v53 = vld [vmem:[%s1183_s17 + $0x68] ss:$12 sps:$4 sm:$0xff]   ;;  %v970_v54 = vld [vmem:[%s1183_s17 + $0x60] ss:$12 sps:$4 sm:$0xff]   ;;  %632 = vperm.xlu1 %950, %v624_v6  }
  0x38   : > { %v971_v55 = vld [vmem:[%s1183_s17 + $0x7c] ss:$12 sps:$4 sm:$0xff]   ;;  %v973_v56 = vld [vmem:[%s1183_s17 + $0x80] ss:$12 sps:$4 sm:$0xff]   ;;  %v974_v57 = vld [vmem:[%s1183_s17 + $0x78] ss:$12 sps:$4 sm:$0xff]  }
  0x39   : > { %574 = vmatpush1.bf16.msra.mxu1 %v957_v44  ;;  %531 = vmatpush1.bf16.msra.mxu0 %v958_v45  ;;  %v975_v58 = vld [vmem:[%s1183_s17 + $0x94] ss:$12 sps:$4 sm:$0xff]   ;;  %v977_v59 = vld [vmem:[%s1183_s17 + $0x98] ss:$12 sps:$4 sm:$0xff]   ;;  %v978_v60 = vld [vmem:[%s1183_s17 + $0x90] ss:$12 sps:$4 sm:$0xff]  }
  0x3a   : > { %575 = vmatprep.subr.bf16.mxu1 %v1015_v36  ;;  %532 = vmatprep.subr.bf16.mxu0 %v959_v46  ;;  %v979_v61 = vld [vmem:[%s1183_s17 + $0xac] ss:$12 sps:$4 sm:$0xff]   ;;  %v981_v62 = vld [vmem:[%s1183_s17 + $0xb0] ss:$12 sps:$4 sm:$0xff]   ;;  %v982_v63 = vld [vmem:[%s1183_s17 + $0xa8] ss:$12 sps:$4 sm:$0xff]  }
  0x3b   : > { %v983_v0 = vld [vmem:[%s1183_s17 + $0xc4] ss:$12 sps:$4 sm:$0xff]   ;;  %v985_v1 = vld [vmem:[%s1183_s17 + $0xc8] ss:$12 sps:$4 sm:$0xff]   ;;  %v986_v2 = vld [vmem:[%s1183_s17 + $0xc0] ss:$12 sps:$4 sm:$0xff]  }
  0x3c   : > { %s317_s10 = scalar_lea.vmem [#allocation3], %s921_s8  ;;  %s910_s18 = smul.u32 (%p1078_p5), 24, %s830_s21 }
  0x3d   : > { %576 = vmatpush1.bf16.msra.mxu1 %v961_v47  ;;  %533 = vmatpush1.bf16.msra.mxu0 %v962_v48 }
  0x3e   : > { %577 = vmatprep.subr.bf16.mxu1 %v1015_v36  ;;  %534 = vmatprep.subr.bf16.mxu0 %v963_v49  ;;  %s742_s12 = scalar_lea.vmem (%p1078_p5), %s1259_s5, %s910_s18 }
  0x41   : > { %578 = vmatpush1.bf16.msra.mxu1 %v965_v50  ;;  %535 = vmatpush1.bf16.msra.mxu0 %v966_v51 }
  0x42   : > { %579 = vmatprep.subr.bf16.mxu1 %v1015_v36  ;;  %536 = vmatprep.subr.bf16.mxu0 %v967_v52 }
  0x45   : > { %580 = vmatpush1.bf16.msra.mxu1 %v969_v53  ;;  %537 = vmatpush1.bf16.msra.mxu0 %v970_v54 }
  0x46   : > { %581 = vmatprep.subr.bf16.mxu1 %v1015_v36  ;;  %538 = vmatprep.subr.bf16.mxu0 %v971_v55 }
  0x49   : > { %582 = vmatpush1.bf16.msra.mxu1 %v973_v56  ;;  %539 = vmatpush1.bf16.msra.mxu0 %v974_v57 }
  0x4a   : > { %583 = vmatprep.subr.bf16.mxu1 %v1015_v36  ;;  %540 = vmatprep.subr.bf16.mxu0 %v975_v58 }
  0x4d   : > { %584 = vmatpush1.bf16.msra.mxu1 %v977_v59  ;;  %541 = vmatpush1.bf16.msra.mxu0 %v978_v60 }
  0x4e   : > { %585 = vmatprep.subr.bf16.mxu1 %v1015_v36  ;;  %542 = vmatprep.subr.bf16.mxu0 %v979_v61 }
  0x51   : > { %586 = vmatpush1.bf16.msra.mxu1 %v981_v62  ;;  %543 = vmatpush1.bf16.msra.mxu0 %v982_v63 }
  0x52   : > { %587 = vmatprep.subr.bf16.mxu1 %v1015_v36  ;;  %544 = vmatprep.subr.bf16.mxu0 %v983_v0 }
  0x55   : > { %588 = vmatpush1.bf16.msra.mxu1 %v985_v1  ;;  %545 = vmatpush1.bf16.msra.mxu0 %v986_v2 }
  0x56   : > { %913 = vmatprep.subr.bf16.mxu1 %v1016_v4 }
  0x58   : > { %604 = vmatmul.mubr.bf16.vlgmr.msra.gmra.mrb[0].mxu1 %v987_v3  ;;  %561 = vmatmul.mubr.bf16.vlgmr.msra.gmra.mrb[0].mxu0 %v987_v3 }
  0x59   : > { %675 = vmatprep.mubr.bf16.mxu0 %v1015_v36  ;;  %915 = vmatprep.mubr.msk.bf16.mxu1 %vm1017_vm1, %v1016_v4 }
  0xaf   : > { %v364_v7 = vpop.permute.xlu0 %363 }
  0xb1   : > { %v628_v33 = vpop.permute.xlu1 %627 }
  0xb3   : > { %v369_v8 = vpop.permute.xlu0 %368 }
  0xb6   : > { %v633_v35 = vpop.permute.xlu1 %632 }
 0x12b   : > { %v605_v9 = vpop.f32.mrb[0].mxu1  ;;  %v562_v11 = vpop.f32.mrb[0].mxu0 }
 0x12c   : > { %v606_v10 = vadd.f32 %v605_v9, %v364_v7  ;;  %v607_v12 = vpop.f32.mrb[1].mxu1  ;;  %v563_v13 = vadd.f32 %v562_v11, %v364_v7  ;;  %v564_v14 = vpop.f32.mrb[1].mxu0 }
 0x12d   : > { %v608_v15 = vpop.f32.mrb[2].mxu1  ;;  %v565_v16 = vadd.f32 %v564_v14, %v364_v7  ;;  %v566_v18 = vpop.f32.mrb[2].mxu0 }
 0x12e   : > { %v609_v17 = vadd.f32 %v608_v15, %v369_v8  ;;  %v610_v19 = vpop.f32.mrb[3].mxu1  ;;  %v567_v20 = vadd.f32 %v566_v18, %v369_v8  ;;  %v568_v21 = vpop.f32.mrb[3].mxu0  ;;  %v614_v22 = vmax.f32 %v606_v10, 0.0  ;;  %v612_v25 = vmax.f32 %v563_v13, 0.0 }
 0x12f   : > { %v569_v24 = vadd.f32 %v568_v21, %v369_v8  ;;  %v613_v27 = vmax.f32 %v565_v16, 0.0 }
 0x130   : > { %v617_v23 = vmax.f32 %v609_v17, 0.0  ;;  %v615_v26 = vmax.f32 %v567_v20, 0.0 }
 0x131   : > { %v616_v29 = vmax.f32 %v569_v24, 0.0 }
 0x132   : > { %v622_v28 = vpack.c.bf16 %v617_v23, %v614_v22  ;;  %v620_v30 = vpack.c.bf16 %v615_v26, %v612_v25 }
 0x133   : > { %v621_v32 = vpack.c.bf16 %v616_v29, %v613_v27 }
 0x134   : > { %914 = vmatpush3.bf16.msra.mxu1 %v622_v28 }
 0x135   : > { %643 = vmatprep.subr.bf16.mxu0 %v621_v32 }
 0x136   : > { %644 = vmatpush1.bf16.msra.mxu0 %v620_v30 }
 0x137   : > { %916 = vmatmul.mubr.msk.bf16.vlgmr.msra.gmra.mrb[4].mxu1 %vm524_vm0, %v990_v31 }
 0x139   : > { %904 = vmatmul.mubr.msk.bf16.vlgmr.msra.gmra.mrb[4].mxu0 %vm524_vm0, %v990_v31 }
 0x20a   : > { %v720_v34 = vpop.f32.mrb[4].mxu1 }
 0x20b   : > { %v721_v36 = vadd.f32 %v720_v34, %v628_v33  ;;  %v917_v37 = vpop.f32.mrb[5].mxu1 }
 0x20c   : > { %v723_v38 = vpop.f32.mrb[6].mxu1  ;;  %v677_v39 = vpop.f32.mrb[4].mxu0  ;;  %739 = sbr.rel (!%p1078_p5) target bundleno = 539 (0x21b), region = 70 }
 0x20d   : > { %729 = vst [vmem:[%s317_s10 + $0x10] sm:$0xff] %v721_v36  ;;  %v724_v40 = vadd.f32 %v723_v38, %v633_v35  ;;  %v918_v41 = vpop.f32.mrb[7].mxu1  ;;  %v678_v42 = vadd.f32 %v677_v39, %v628_v33  ;;  %v679_v43 = vpop.f32.mrb[5].mxu0 }
 0x20e   : > { %v680_v44 = vadd.f32 %v679_v43, %v628_v33  ;;  %v681_v45 = vpop.f32.mrb[6].mxu0 }
 0x20f   : > { %732 = vst [vmem:[%s317_s10 + $0x28] sm:$0x7f] %v724_v40  ;;  %727 = vst [vmem:[%s317_s10] sm:$0xff] %v678_v42  ;;  %v682_v46 = vadd.f32 %v681_v45, %v633_v35  ;;  %v683_v47 = vpop.f32.mrb[7].mxu0 }
 0x210   : > { %728 = vst [vmem:[%s317_s10 + $0x8] sm:$0xff] %v680_v44  ;;  %v684_v48 = vadd.f32 %v683_v47, %v633_v35 }
 0x211   : > { %730 = vst [vmem:[%s317_s10 + $0x18] sm:$0x7f] %v682_v46 }
 0x212   : > { %731 = vst [vmem:[%s317_s10 + $0x20] sm:$0x7f] %v684_v48 }
 0x214   : > { %v759_v51 = vld [vmem:[%s317_s10 + $0x10] sm:$0xff] }
 0x215   : > { %760 = vst [vmem:[%s742_s12 + $0x10] sm:$0xff] %v759_v51 }
 0x216   : > { %v755_v49 = vld [vmem:[%s317_s10] sm:$0xff]  ;;  %v765_v54 = vld [vmem:[%s317_s10 + $0x28] sm:$0xff] }
 0x217   : > { %v757_v50 = vld [vmem:[%s317_s10 + $0x8] sm:$0xff]  ;;  %756 = vst [vmem:[%s742_s12] sm:$0xff] %v755_v49  ;;  %766 = vst [vmem:[%s742_s12 + $0x40] sm:$0xff] %v765_v54 }
 0x218   : > { %v761_v52 = vld [vmem:[%s317_s10 + $0x18] sm:$0xff]  ;;  %758 = vst [vmem:[%s742_s12 + $0x8] sm:$0xff] %v757_v50 }
 0x219   : > { %v763_v53 = vld [vmem:[%s317_s10 + $0x20] sm:$0xff]  ;;  %762 = vst [vmem:[%s742_s12 + $0x30] sm:$0xff] %v761_v52 }
 0x21a   : > { %764 = vst [vmem:[%s742_s12 + $0x38] sm:$0xff] %v763_v53 }
 0x21b PF: > { %p12_p10 = scmp.ge.s32.totalorder %s1065_s22, 4   ;;  %s1261_s18 = smov %s1009_s19 }
 0x21c   : > { %s1262_s19 = smov %s1076_s25  ;;  %s1263_s20 = smov %s1065_s22 }
 0x21d   :  { %14 = sbr.rel (!%p12_p10) target bundleno = 2 (0x2), region = 130 }

</bundles_post_ra>
